<compile_context>
chip_gen: v6e
topology: v6e:2x2x1
jax: 0.10.0
libtpu: 0.0.40
codegen_flags: <defaults>
</compile_context>

<pallas_src>
import functools

import jax
import jax.numpy as jnp
from jax.experimental import pallas as pl
from jax.experimental.pallas import tpu as pltpu


def _round_up(x, m):
    return ((x + m - 1) // m) * m


# ----------------------------------------------------------------------------
# Pallas kernel: fused direct conv (stride-1, flat spatial) + BN(eval) + ReLU
# ----------------------------------------------------------------------------
def _conv_bn_relu_kernel(x_ref, w_ref, scale_ref, bias_ref, o_ref,
                         *, nb, kh, kw, wp, l_out):
    # x_ref:     (nb, C, L_in)    bf16  zero-padded image, spatial flattened
    #                                   with row stride Wp (+ zero tail)
    # w_ref:     (KH*KW, OC, C)   bf16  one (OC, C) weight slab per tap
    # scale_ref: (OC, 1)          f32   gamma / sqrt(var + eps)
    # bias_ref:  (OC, 1)          f32   (conv_b - mean) * scale + beta
    # o_ref:     (nb, OC, L_out)  f32   stride-1 conv output, row stride Wp
    oc = o_ref.shape[1]
    wv = w_ref[...]                                   # resident across steps
    scale = scale_ref[...]
    bias = bias_ref[...]
    for b in range(nb):                               # static unroll
        xb = x_ref[b]                                 # (C, L_in) bf16
        acc = jnp.zeros((oc, l_out), jnp.float32)
        for i in range(kh):                           # KH*KW tap matmuls,
            for j in range(kw):                       # f32 accumulation
                sh = i * wp + j                       # static lane shift
                acc = acc + jnp.dot(wv[i * kw + j], xb[:, sh:sh + l_out],
                                    preferred_element_type=jnp.float32)
        y = acc * scale + bias                        # f32 BN epilogue
        o_ref[b] = jnp.maximum(y, 0.0).astype(o_ref.dtype)


@functools.partial(jax.jit, static_argnames=("kernel_size", "stride", "padding"))
def conv2d_block_forward(x, conv_w, conv_b, gamma, beta, run_mean, run_var,
                         kernel_size, stride, padding, eps=1e-5):
    """Eval-mode Conv2d -> BatchNorm2d -> ReLU -> Dropout(identity).

    x:       (N, C, H, W)  float32, NCHW
    conv_w:  (OC, C, KH, KW)
    conv_b, gamma, beta, run_mean, run_var: (OC,)
    returns: (N, OC, OH, OW) float32
    """
    n, c, h, w = x.shape
    oc = conv_w.shape[0]
    kh = kw = kernel_size

    hp, wp = h + 2 * padding, w + 2 * padding
    oh1, ow1 = hp - kh + 1, wp - kw + 1              # stride-1 output dims
    oh = (hp - kh) // stride + 1                     # final output dims
    ow = (wp - kw) // stride + 1

    # --- glue: zero-pad + flatten spatial + cast to bf16 (one fused pass) ----
    l_out = _round_up(oh1 * wp, 128)                          # lane-dense tile
    l_in = _round_up(l_out + (kh - 1) * wp + (kw - 1), 128)   # covers all taps
    xp = jnp.pad(x, ((0, 0), (0, 0), (padding, padding), (padding, padding)))
    xf = jnp.pad(xp.reshape(n, c, hp * wp),
                 ((0, 0), (0, 0), (0, l_in - hp * wp))).astype(jnp.bfloat16)

    # Weight as one (OC, C) slab per tap; BN scale stays in the f32 epilogue.
    w_taps = conv_w.transpose(2, 3, 0, 1).reshape(kh * kw, oc, c).astype(jnp.bfloat16)
    scale = (gamma / jnp.sqrt(run_var + eps)).astype(jnp.float32).reshape(oc, 1)
    bias = ((conv_b - run_mean) * scale[:, 0] + beta).astype(jnp.float32).reshape(oc, 1)

    # --- batch tiling: >=2 grid steps whenever N>=2 (v7x has 2 TensorCores),
    #     grow nb only while per-step input stays small -----------------------
    per_img_bytes = c * l_in * 2
    nb = 1
    while (nb * 2 <= 8 and n % (nb * 2) == 0 and n // (nb * 2) >= 2
           and nb * per_img_bytes < (1 << 20)):
        nb *= 2

    kern = functools.partial(_conv_bn_relu_kernel,
                             nb=nb, kh=kh, kw=kw, wp=wp, l_out=l_out)
    out_wide = pl.pallas_call(
        kern,
        out_shape=jax.ShapeDtypeStruct((n, oc, l_out), jnp.float32),
        grid=(n // nb,),
        in_specs=[
            pl.BlockSpec((nb, c, l_in), lambda b: (b, 0, 0)),       # image block
            pl.BlockSpec((kh * kw, oc, c), lambda b: (0, 0, 0)),    # weights
            pl.BlockSpec((oc, 1), lambda b: (0, 0)),                # BN scale
            pl.BlockSpec((oc, 1), lambda b: (0, 0)),                # fused bias
        ],
        out_specs=pl.BlockSpec((nb, oc, l_out), lambda b: (b, 0, 0)),
        compiler_params=pltpu.CompilerParams(
            dimension_semantics=("parallel",),
            vmem_limit_bytes=32 * 1024 * 1024,       # safe on v5e/v6e/v7x
        ),
    )(xf, w_taps, scale, bias)

    # Crop flat stride-1 result to NCHW (stride>1 = subsample).  No transpose.
    out = out_wide[:, :, : oh1 * wp].reshape(n, oc, oh1, wp)
    out = out[:, :, ::stride, ::stride][:, :, :oh, :ow]
    return out


if __name__ == "__main__":
    # Small shapes consistent with the module: Conv2DBlock(4, 8, 3, 1, 1, 0.1)
    N, C, H, W = 2, 4, 16, 16
    OC, KS, STRIDE, PAD = 8, 3, 1, 1
    EPS = 1e-5

    key = jax.random.PRNGKey(0)
    kx, kw, kb, kg, kbe, km, kv = jax.random.split(key, 7)

    x = jax.random.normal(kx, (N, C, H, W), dtype=jnp.float32)
    conv_w = 0.1 * jax.random.normal(kw, (OC, C, KS, KS), dtype=jnp.float32)
    conv_b = 0.1 * jax.random.normal(kb, (OC,), dtype=jnp.float32)
    gamma = 1.0 + 0.1 * jax.random.normal(kg, (OC,), dtype=jnp.float32)
    beta = 0.1 * jax.random.normal(kbe, (OC,), dtype=jnp.float32)
    run_mean = 0.1 * jax.random.normal(km, (OC,), dtype=jnp.float32)
    run_var = jnp.abs(1.0 + 0.1 * jax.random.normal(kv, (OC,), dtype=jnp.float32))

    out = conv2d_block_forward(
        x, conv_w, conv_b, gamma, beta, run_mean, run_var,
        kernel_size=KS, stride=STRIDE, padding=PAD, eps=EPS)
    out = jax.block_until_ready(out)

    assert out.shape == (N, OC, H, W), out.shape
    assert bool(jnp.all(out >= 0.0))  # ReLU post-condition

    # f32 reference (XLA conv) — tolerance absorbs the bf16 MXU operands.
    ref_conv = jax.lax.conv_general_dilated(
        x, conv_w, window_strides=(STRIDE, STRIDE),
        padding=[(PAD, PAD), (PAD, PAD)],
        dimension_numbers=("NCHW", "OIHW", "NCHW"),
    ) + conv_b.reshape(1, -1, 1, 1)
    ref_bn = ((ref_conv - run_mean.reshape(1, -1, 1, 1))
              / jnp.sqrt(run_var.reshape(1, -1, 1, 1) + EPS)
              * gamma.reshape(1, -1, 1, 1) + beta.reshape(1, -1, 1, 1))
    ref = jnp.maximum(ref_bn, 0.0)
    assert bool(jnp.allclose(out, ref, atol=1e-1, rtol=1e-1)), \
        float(jnp.max(jnp.abs(out - ref)))

    print("KERNEL_OK")
</pallas_src>

<mosaic_0001>
module attributes {stable_mosaic.version = 11 : i64} {
  func.func @_conv_bn_relu_kernel(%arg0: i32, %arg1: memref<1x4x512xbf16, #tpu.memory_space<vmem>>, %arg2: memref<9x8x4xbf16, #tpu.memory_space<vmem>>, %arg3: memref<8x1xf32, #tpu.memory_space<vmem>>, %arg4: memref<8x1xf32, #tpu.memory_space<vmem>>, %arg5: memref<1x8x384xf32, #tpu.memory_space<vmem>>) attributes {dimension_semantics = [#tpu.dimension_semantics<parallel>], iteration_bounds = array<i64: 2>, scalar_prefetch = 0 : i64, scratch_operands = 0 : i64, tpu.core_type = #tpu.core_type<tc>, window_params = [{transform_indices = @transform_0, window_bounds = array<i64: 1, 4, 512>}, {pipeline_mode = #tpu.pipeline_mode<synchronous>, transform_indices = @transform_1, window_bounds = array<i64: 9, 8, 4>}, {pipeline_mode = #tpu.pipeline_mode<synchronous>, transform_indices = @transform_2, window_bounds = array<i64: 8, 1>}, {pipeline_mode = #tpu.pipeline_mode<synchronous>, transform_indices = @transform_3, window_bounds = array<i64: 8, 1>}, {transform_indices = @transform_4, window_bounds = array<i64: 1, 8, 384>}]} {
    %c0 = arith.constant 0 : index
    %c0_0 = arith.constant 0 : index
    %c0_1 = arith.constant 0 : index
    %0 = vector.load %arg2[%c0, %c0_0, %c0_1] : memref<9x8x4xbf16, #tpu.memory_space<vmem>>, vector<9x8x4xbf16>
    %c0_2 = arith.constant 0 : index
    %c0_3 = arith.constant 0 : index
    %1 = vector.load %arg3[%c0_2, %c0_3] : memref<8x1xf32, #tpu.memory_space<vmem>>, vector<8x1xf32>
    %c0_4 = arith.constant 0 : index
    %c0_5 = arith.constant 0 : index
    %2 = vector.load %arg4[%c0_4, %c0_5] : memref<8x1xf32, #tpu.memory_space<vmem>>, vector<8x1xf32>
    %c0_6 = arith.constant 0 : index
    %c0_7 = arith.constant 0 : index
    %c0_8 = arith.constant 0 : index
    %3 = vector.load %arg1[%c0_6, %c0_7, %c0_8] : memref<1x4x512xbf16, #tpu.memory_space<vmem>>, vector<1x4x512xbf16>
    %4 = vector.shape_cast %3 : vector<1x4x512xbf16> to vector<4x512xbf16>
    %cst = arith.constant 0.000000e+00 : f32
    %5 = vector.broadcast %cst : f32 to vector<8x384xf32>
    %6 = vector.extract_strided_slice %0 {offsets = [0, 0, 0], sizes = [1, 8, 4], strides = [1, 1, 1]} : vector<9x8x4xbf16> to vector<1x8x4xbf16>
    %7 = vector.shape_cast %6 : vector<1x8x4xbf16> to vector<8x4xbf16>
    %8 = vector.extract_strided_slice %4 {offsets = [0, 0], sizes = [4, 384], strides = [1, 1]} : vector<4x512xbf16> to vector<4x384xbf16>
    %cst_9 = arith.constant dense<0.000000e+00> : vector<8x384xf32>
    %9 = tpu.matmul %7, %8, %cst_9 {dimension_numbers = #tpu.dot_dimension_numbers<[1], [0], [0], [1], [0, 0, 1, 1], [], []>} : vector<8x4xbf16>, vector<4x384xbf16>, vector<8x384xf32> -> vector<8x384xf32>
    %10 = arith.addf %5, %9 : vector<8x384xf32>
    %11 = vector.extract_strided_slice %0 {offsets = [1, 0, 0], sizes = [1, 8, 4], strides = [1, 1, 1]} : vector<9x8x4xbf16> to vector<1x8x4xbf16>
    %12 = vector.shape_cast %11 : vector<1x8x4xbf16> to vector<8x4xbf16>
    %13 = vector.extract_strided_slice %4 {offsets = [0, 1], sizes = [4, 384], strides = [1, 1]} : vector<4x512xbf16> to vector<4x384xbf16>
    %cst_10 = arith.constant dense<0.000000e+00> : vector<8x384xf32>
    %14 = tpu.matmul %12, %13, %cst_10 {dimension_numbers = #tpu.dot_dimension_numbers<[1], [0], [0], [1], [0, 0, 1, 1], [], []>} : vector<8x4xbf16>, vector<4x384xbf16>, vector<8x384xf32> -> vector<8x384xf32>
    %15 = arith.addf %10, %14 : vector<8x384xf32>
    %16 = vector.extract_strided_slice %0 {offsets = [2, 0, 0], sizes = [1, 8, 4], strides = [1, 1, 1]} : vector<9x8x4xbf16> to vector<1x8x4xbf16>
    %17 = vector.shape_cast %16 : vector<1x8x4xbf16> to vector<8x4xbf16>
    %18 = vector.extract_strided_slice %4 {offsets = [0, 2], sizes = [4, 384], strides = [1, 1]} : vector<4x512xbf16> to vector<4x384xbf16>
    %cst_11 = arith.constant dense<0.000000e+00> : vector<8x384xf32>
    %19 = tpu.matmul %17, %18, %cst_11 {dimension_numbers = #tpu.dot_dimension_numbers<[1], [0], [0], [1], [0, 0, 1, 1], [], []>} : vector<8x4xbf16>, vector<4x384xbf16>, vector<8x384xf32> -> vector<8x384xf32>
    %20 = arith.addf %15, %19 : vector<8x384xf32>
    %21 = vector.extract_strided_slice %0 {offsets = [3, 0, 0], sizes = [1, 8, 4], strides = [1, 1, 1]} : vector<9x8x4xbf16> to vector<1x8x4xbf16>
    %22 = vector.shape_cast %21 : vector<1x8x4xbf16> to vector<8x4xbf16>
    %23 = vector.extract_strided_slice %4 {offsets = [0, 18], sizes = [4, 384], strides = [1, 1]} : vector<4x512xbf16> to vector<4x384xbf16>
    %cst_12 = arith.constant dense<0.000000e+00> : vector<8x384xf32>
    %24 = tpu.matmul %22, %23, %cst_12 {dimension_numbers = #tpu.dot_dimension_numbers<[1], [0], [0], [1], [0, 0, 1, 1], [], []>} : vector<8x4xbf16>, vector<4x384xbf16>, vector<8x384xf32> -> vector<8x384xf32>
    %25 = arith.addf %20, %24 : vector<8x384xf32>
    %26 = vector.extract_strided_slice %0 {offsets = [4, 0, 0], sizes = [1, 8, 4], strides = [1, 1, 1]} : vector<9x8x4xbf16> to vector<1x8x4xbf16>
    %27 = vector.shape_cast %26 : vector<1x8x4xbf16> to vector<8x4xbf16>
    %28 = vector.extract_strided_slice %4 {offsets = [0, 19], sizes = [4, 384], strides = [1, 1]} : vector<4x512xbf16> to vector<4x384xbf16>
    %cst_13 = arith.constant dense<0.000000e+00> : vector<8x384xf32>
    %29 = tpu.matmul %27, %28, %cst_13 {dimension_numbers = #tpu.dot_dimension_numbers<[1], [0], [0], [1], [0, 0, 1, 1], [], []>} : vector<8x4xbf16>, vector<4x384xbf16>, vector<8x384xf32> -> vector<8x384xf32>
    %30 = arith.addf %25, %29 : vector<8x384xf32>
    %31 = vector.extract_strided_slice %0 {offsets = [5, 0, 0], sizes = [1, 8, 4], strides = [1, 1, 1]} : vector<9x8x4xbf16> to vector<1x8x4xbf16>
    %32 = vector.shape_cast %31 : vector<1x8x4xbf16> to vector<8x4xbf16>
    %33 = vector.extract_strided_slice %4 {offsets = [0, 20], sizes = [4, 384], strides = [1, 1]} : vector<4x512xbf16> to vector<4x384xbf16>
    %cst_14 = arith.constant dense<0.000000e+00> : vector<8x384xf32>
    %34 = tpu.matmul %32, %33, %cst_14 {dimension_numbers = #tpu.dot_dimension_numbers<[1], [0], [0], [1], [0, 0, 1, 1], [], []>} : vector<8x4xbf16>, vector<4x384xbf16>, vector<8x384xf32> -> vector<8x384xf32>
    %35 = arith.addf %30, %34 : vector<8x384xf32>
    %36 = vector.extract_strided_slice %0 {offsets = [6, 0, 0], sizes = [1, 8, 4], strides = [1, 1, 1]} : vector<9x8x4xbf16> to vector<1x8x4xbf16>
    %37 = vector.shape_cast %36 : vector<1x8x4xbf16> to vector<8x4xbf16>
    %38 = vector.extract_strided_slice %4 {offsets = [0, 36], sizes = [4, 384], strides = [1, 1]} : vector<4x512xbf16> to vector<4x384xbf16>
    %cst_15 = arith.constant dense<0.000000e+00> : vector<8x384xf32>
    %39 = tpu.matmul %37, %38, %cst_15 {dimension_numbers = #tpu.dot_dimension_numbers<[1], [0], [0], [1], [0, 0, 1, 1], [], []>} : vector<8x4xbf16>, vector<4x384xbf16>, vector<8x384xf32> -> vector<8x384xf32>
    %40 = arith.addf %35, %39 : vector<8x384xf32>
    %41 = vector.extract_strided_slice %0 {offsets = [7, 0, 0], sizes = [1, 8, 4], strides = [1, 1, 1]} : vector<9x8x4xbf16> to vector<1x8x4xbf16>
    %42 = vector.shape_cast %41 : vector<1x8x4xbf16> to vector<8x4xbf16>
    %43 = vector.extract_strided_slice %4 {offsets = [0, 37], sizes = [4, 384], strides = [1, 1]} : vector<4x512xbf16> to vector<4x384xbf16>
    %cst_16 = arith.constant dense<0.000000e+00> : vector<8x384xf32>
    %44 = tpu.matmul %42, %43, %cst_16 {dimension_numbers = #tpu.dot_dimension_numbers<[1], [0], [0], [1], [0, 0, 1, 1], [], []>} : vector<8x4xbf16>, vector<4x384xbf16>, vector<8x384xf32> -> vector<8x384xf32>
    %45 = arith.addf %40, %44 : vector<8x384xf32>
    %46 = vector.extract_strided_slice %0 {offsets = [8, 0, 0], sizes = [1, 8, 4], strides = [1, 1, 1]} : vector<9x8x4xbf16> to vector<1x8x4xbf16>
    %47 = vector.shape_cast %46 : vector<1x8x4xbf16> to vector<8x4xbf16>
    %48 = vector.extract_strided_slice %4 {offsets = [0, 38], sizes = [4, 384], strides = [1, 1]} : vector<4x512xbf16> to vector<4x384xbf16>
    %cst_17 = arith.constant dense<0.000000e+00> : vector<8x384xf32>
    %49 = tpu.matmul %47, %48, %cst_17 {dimension_numbers = #tpu.dot_dimension_numbers<[1], [0], [0], [1], [0, 0, 1, 1], [], []>} : vector<8x4xbf16>, vector<4x384xbf16>, vector<8x384xf32> -> vector<8x384xf32>
    %50 = arith.addf %45, %49 : vector<8x384xf32>
    %51 = vector.broadcast %1 : vector<8x1xf32> to vector<8x384xf32>
    %52 = arith.mulf %50, %51 : vector<8x384xf32>
    %53 = vector.broadcast %2 : vector<8x1xf32> to vector<8x384xf32>
    %54 = arith.addf %52, %53 : vector<8x384xf32>
    %cst_18 = arith.constant 0.000000e+00 : f32
    %55 = vector.broadcast %cst_18 : f32 to vector<8x384xf32>
    %56 = arith.maximumf %54, %55 : vector<8x384xf32>
    %c0_19 = arith.constant 0 : index
    %c0_20 = arith.constant 0 : index
    %c0_21 = arith.constant 0 : index
    %57 = vector.load %arg5[%c0_19, %c0_20, %c0_21] : memref<1x8x384xf32, #tpu.memory_space<vmem>>, vector<1x8x384xf32>
    %58 = vector.shape_cast %57 : vector<1x8x384xf32> to vector<8x384xf32>
    %59 = vector.shape_cast %56 : vector<8x384xf32> to vector<1x8x384xf32>
    tpu.vector_store %arg5[%c0_19, %c0_20, %c0_21], %59 {strides = array<i32>} : memref<1x8x384xf32, #tpu.memory_space<vmem>>, vector<1x8x384xf32>,
    return
  }
  func.func @transform_0(%arg0: i32) -> (i32, i32, i32) {
    %c0_i32 = arith.constant 0 : i32
    %c0_i32_0 = arith.constant 0 : i32
    %c0_i32_1 = arith.constant 0 : i32
    return %arg0, %c0_i32, %c0_i32_0 : i32, i32, i32
  }
  func.func @transform_1(%arg0: i32) -> (i32, i32, i32) {
    %c0_i32 = arith.constant 0 : i32
    %c0_i32_0 = arith.constant 0 : i32
    %c0_i32_1 = arith.constant 0 : i32
    %c0_i32_2 = arith.constant 0 : i32
    return %c0_i32, %c0_i32_0, %c0_i32_1 : i32, i32, i32
  }
  func.func @transform_2(%arg0: i32) -> (i32, i32) {
    %c0_i32 = arith.constant 0 : i32
    %c0_i32_0 = arith.constant 0 : i32
    %c0_i32_1 = arith.constant 0 : i32
    return %c0_i32, %c0_i32_0 : i32, i32
  }
  func.func @transform_3(%arg0: i32) -> (i32, i32) {
    %c0_i32 = arith.constant 0 : i32
    %c0_i32_0 = arith.constant 0 : i32
    %c0_i32_1 = arith.constant 0 : i32
    return %c0_i32, %c0_i32_0 : i32, i32
  }
  func.func @transform_4(%arg0: i32) -> (i32, i32, i32) {
    %c0_i32 = arith.constant 0 : i32
    %c0_i32_0 = arith.constant 0 : i32
    %c0_i32_1 = arith.constant 0 : i32
    return %arg0, %c0_i32, %c0_i32_0 : i32, i32, i32
  }
}

</mosaic_0001>

<bundles_post_ra>
// kernel: conv2d_block_forward.1
= control target key start
LH: loop header
LB: loop body
LE: loop exit
PB: predicated region body
PF: predicated region fallthrough
CT: control target
= control target key end

     0   :  { %s1441_s15 = smov 0   ;;  %s1604_s0 = inlined_call_operand.vmem [shape: bf16[2,4,512], index: 0, kind: input, shape index: {}]   ;;  %s1605_s1 = inlined_call_operand.vmem [shape: bf16[9,8,4], index: 1, kind: input, shape index: {}]   ;;  %s1606_s2 = inlined_call_operand.vmem [shape: f32[8,1], index: 2, kind: input, shape index: {}]   ;;  %s1607_s3 = inlined_call_operand.vmem [shape: f32[8,1], index: 3, kind: input, shape index: {}]   ;;  %s1608_s4 = inlined_call_operand.vmem [shape: f32[2,8,384], index: 4, kind: output, shape index: {}]  }
   0x1 LB: > { %s1262_s16 = sadd.s32 4294967295, %s1402_s15   ;;  %p1266_p0 = scmp.ge.s32.totalorder %s1402_s15, 1  ;;  %s1402_s15 = sphi %s1441_s15, %s14_s15  }
   0x2   : > { %p162_p1 = scmp.lt.s32.totalorder %s1402_s15, 3 }
   0x4   : > { %p163_p2 = pnand %p1266_p0, %p162_p1 }
   0x5   : > { %p188_p3 = scmp.lt.s32.totalorder (!%p163_p2), %s1262_s16, 1  ;;  %s1408_s21 = smov (!%p163_p2), 127  }
   0x6   : > { %166 = sbr.rel (%p163_p2) target bundleno = 412 (0x19c), region = 36  ;;  %s1409_s22 = smov (!%p163_p2), 126  }
   0x7   : > { %s1410_s23 = smov (!%p163_p2), 110   ;;  %s1411_s24 = smov (!%p163_p2), 109  }
   0x8   : > { %s1412_s25 = smov (!%p163_p2), 108   ;;  %s1413_s26 = smov (!%p163_p2), 92  }
   0x9   : > { %s1414_s27 = smov (!%p163_p2), 91   ;;  %s1415_s28 = smov (!%p163_p2), 90  }
   0xb   : > { %v216_v0 = vlaneseq  ;;  %v1404_v1 = vmov 1983009808   ;;  %s1610_s16 = smov (!%p188_p3, %s1262_s16), 1  ;;  %v1405_v5 = vmov 0.0   ;;  %v1406_v6 = vmov 0   ;;  %v208_v14 = vld [vmem:[%s1606_s2] sm:$0xff] }
   0xc   : > { %v214_v2 = vunpack.c.l.s4 %v1404_v1  ;;  %1318 = vmatprep.subr.bf16.mxu1 %v1405_v5  ;;  %287 = vmatprep.mubr.bf16.mxu0 %v1406_v6  ;;  %s1299_s17 = sshll.u32 %s1610_s16, 3  ;;  %vm1407_vm0 = vmmov 0   ;;  %v209_v15 = vld [vmem:[%s1607_s3] sm:$0xff]  ;;  %vm237_vm1 = vcmask 1039360   ;;  %vm245_vm2 = vcmask 1041408  }
   0xd   : > { %v217_v3 = vshrl.u32 %v216_v0, 7  ;;  %1393 = vset.pattern.permute.xlu0 %v1406_v6  ;;  %1394 = vset.pattern.permute.xlu1 %v1406_v6  ;;  %s192_s20 = scalar_lea.vmem %s1604_s0, %s1299_s17  ;;  %v200_v24 = vld [vmem:[%s1605_s1 + $0x4] sm:$0xf]  ;;  %vm241_vm3 = vcmask 31744   ;;  %vm437_vm4 = vcmask 1031168   ;;  %vm545_vm5 = vcmask 900096  }
   0xe   : > { %v215_v4 = vunpack.c.0.s8 %v214_v2  ;;  %v210_v8 = vld [vmem:[%s192_s20] sm:$0xff]  ;;  %1320 = vmatprep.mubr.msk.bf16.mxu1 %vm1407_vm0, %v1405_v5  ;;  %v201_v45 = vld [vmem:[%s1605_s1 + $0x8] sm:$0xf]  ;;  %vm653_vm6 = vcmask 891904   ;;  %v202_v55 = vld [vmem:[%s1605_s1 + $0xc] sm:$0xf] }
   0xf   : > { %v212_v10 = vcombine.high %v210_v8, %v210_v8  ;;  %v199_v35 = vld [vmem:[%s1605_s1] sm:$0xf]  ;;  %vm761_vm7 = vcmask 883712   ;;  %v203_v1 = vld [vmem:[%s1605_s1 + $0x10] sm:$0xf]  ;;  %vm869_vm8 = vcmask 752640  }
  0x10   : > { %v218_v7 = vsub.s32 %v215_v4, %v217_v3  ;;  %vm977_vm9 = vcmask 744448   ;;  %vm1085_vm10 = vcmask 736256  }
  0x12   : > { %v1461_v9 = vrot.slane %v210_v8, %v218_v7  ;;  %v1464_v11 = vrot.slane %v212_v10, %v218_v7 }
  0x14   : > { %229 = vrot.lane.b32.xlu0 %v1461_v9, %s1408_s21  ;;  %v227_v12 = vcombine.high %v1461_v9, %v1461_v9  ;;  %233 = vrot.lane.b32.xlu1 %v1464_v11, %s1408_s21  ;;  %v228_v13 = vcombine.high %v1464_v11, %v1464_v11  ;;  %v340_v27 = vsel %vm245_vm2, %v1461_v9, 0  ;;  %v346_v29 = vsel %vm245_vm2, %v1464_v11, 0 }
  0x18   : > { %231 = vrot.lane.b32.xlu0 %v227_v12, %s1408_s21  ;;  %235 = vrot.lane.b32.xlu1 %v228_v13, %s1408_s21 }
  0x1c   : > { %429 = vrot.lane.b32.xlu0 %v1461_v9, %s1409_s22  ;;  %431 = vrot.lane.b32.xlu1 %v227_v12, %s1409_s22 }
  0x20   : > { %433 = vrot.lane.b32.xlu0 %v1464_v11, %s1409_s22  ;;  %435 = vrot.lane.b32.xlu1 %v228_v13, %s1409_s22 }
  0x24   : > { %537 = vrot.lane.b32.xlu0 %v1461_v9, %s1410_s23  ;;  %539 = vrot.lane.b32.xlu1 %v227_v12, %s1410_s23 }
  0x28   : > { %541 = vrot.lane.b32.xlu0 %v1464_v11, %s1410_s23  ;;  %543 = vrot.lane.b32.xlu1 %v228_v13, %s1410_s23 }
  0x2c   : > { %645 = vrot.lane.b32.xlu0 %v1461_v9, %s1411_s24  ;;  %647 = vrot.lane.b32.xlu1 %v227_v12, %s1411_s24 }
  0x30   : > { %649 = vrot.lane.b32.xlu0 %v1464_v11, %s1411_s24  ;;  %651 = vrot.lane.b32.xlu1 %v228_v13, %s1411_s24 }
  0x34   : > { %753 = vrot.lane.b32.xlu0 %v1461_v9, %s1412_s25  ;;  %755 = vrot.lane.b32.xlu1 %v227_v12, %s1412_s25 }
  0x38   : > { %757 = vrot.lane.b32.xlu0 %v1464_v11, %s1412_s25  ;;  %759 = vrot.lane.b32.xlu1 %v228_v13, %s1412_s25 }
  0x3c   : > { %861 = vrot.lane.b32.xlu0 %v1461_v9, %s1413_s26  ;;  %863 = vrot.lane.b32.xlu1 %v227_v12, %s1413_s26 }
  0x40   : > { %865 = vrot.lane.b32.xlu0 %v1464_v11, %s1413_s26  ;;  %867 = vrot.lane.b32.xlu1 %v228_v13, %s1413_s26 }
  0x44   : > { %969 = vrot.lane.b32.xlu0 %v1461_v9, %s1414_s27  ;;  %971 = vrot.lane.b32.xlu1 %v227_v12, %s1414_s27 }
  0x48   : > { %973 = vrot.lane.b32.xlu0 %v1464_v11, %s1414_s27  ;;  %975 = vrot.lane.b32.xlu1 %v228_v13, %s1414_s27  ;;  %s1372_s27 = smul.u32 24, %s1610_s16 }
  0x4a   : > { %s197_s30 = scalar_lea.vmem %s1608_s4, %s1372_s27 }
  0x4c   : > { %1077 = vrot.lane.b32.xlu0 %v1461_v9, %s1415_s28  ;;  %1079 = vrot.lane.b32.xlu1 %v227_v12, %s1415_s28 }
  0x50   : > { %1081 = vrot.lane.b32.xlu0 %v1464_v11, %s1415_s28  ;;  %1083 = vrot.lane.b32.xlu1 %v228_v13, %s1415_s28  ;;  %v204_v13 = vld [vmem:[%s1605_s1 + $0x14] sm:$0xf] }
  0x54   : > { %1187 = vperm.xlu0 %1393, %v208_v14   ;;  %1195 = vperm.xlu1 %1394, %v209_v15  }
  0x86   : > { %v230_v16 = vpop.permute.xlu0 %229  ;;  %v234_v17 = vpop.permute.xlu1 %233 }
  0x8a   : > { %v232_v18 = vpop.permute.xlu0 %231  ;;  %v236_v21 = vpop.permute.xlu1 %235 }
  0x8b   : > { %v239_v19 = vsel %vm237_vm1, %v232_v18, %v234_v17  ;;  %v238_v20 = vsel %vm237_vm1, %v230_v16, %v232_v18  ;;  %v240_v23 = vsel %vm237_vm1, %v234_v17, %v236_v21 }
  0x8c   : > { %1270 = vmatprep.subr.msk.bf16.mxu0 %vm245_vm2, %v239_v19  ;;  %v247_v22 = vsel %vm245_vm2, %v238_v20, 0  ;;  %v253_v25 = vsel %vm245_vm2, %v240_v23, 0  ;;  %v205_v23 = vld [vmem:[%s1605_s1 + $0x18] sm:$0xf] }
  0x8d   : > { %270 = vmatpush1.bf16.msra.mxu0 %v247_v22  ;;  %1319 = vmatpush3.bf16.msra.mxu1 %v253_v25 }
  0x8e   : > { %v430_v26 = vpop.permute.xlu0 %429  ;;  %1273 = vmatprep.subr.msk.bf16.mxu0 %vm245_vm2, %v227_v12  ;;  %1324 = vmatprep.subr.bf16.mxu1 %v1405_v5  ;;  %v432_v28 = vpop.permute.xlu1 %431 }
  0x8f   : > { %v438_v31 = vsel %vm437_vm4, %v430_v26, %v432_v28 }
  0x90   : > { %1271 = vmatmul.mubr.msk.bf16.vlgmr.msra.gmra.mxu0 %vm241_vm3, %v200_v24  ;;  %1321 = vmatmul.mubr.msk.bf16.vlgmr.msra.gmra.mxu1 %vm241_vm3, %v200_v24  ;;  %v445_v36 = vsel %vm245_vm2, %v438_v31, 0 }
  0x91   : > { %363 = vmatpush1.bf16.msra.mxu0 %v340_v27  ;;  %380 = vmatprep.mubr.bf16.mxu0 %v1406_v6 }
  0x92   : > { %v434_v30 = vpop.permute.xlu0 %433  ;;  %1325 = vmatpush3.bf16.msra.mxu1 %v346_v29  ;;  %1326 = vmatprep.mubr.msk.bf16.mxu1 %vm1407_vm0, %v1405_v5  ;;  %v436_v33 = vpop.permute.xlu1 %435 }
  0x93   : > { %v439_v32 = vsel %vm437_vm4, %v432_v28, %v434_v30  ;;  %1330 = vmatprep.subr.bf16.mxu1 %v1405_v5  ;;  %v440_v34 = vsel %vm437_vm4, %v434_v30, %v436_v33  ;;  %v206_v33 = vld [vmem:[%s1605_s1 + $0x1c] sm:$0xf] }
  0x94   : > { %1276 = vmatprep.subr.msk.bf16.mxu0 %vm245_vm2, %v439_v32  ;;  %v451_v38 = vsel %vm245_vm2, %v440_v34, 0 }
  0x96   : > { %v538_v37 = vpop.permute.xlu0 %537  ;;  %v540_v39 = vpop.permute.xlu1 %539 }
  0x97   : > { %v546_v41 = vsel %vm545_vm5, %v538_v37, %v540_v39 }
  0x98   : > { %1274 = vmatmul.mubr.msk.bf16.vlgmr.msra.gmra.mxu0 %vm241_vm3, %v199_v35  ;;  %1327 = vmatmul.mubr.msk.bf16.vlgmr.msra.gmra.mxu1 %vm241_vm3, %v199_v35  ;;  %v553_v46 = vsel %vm245_vm2, %v546_v41, 0 }
  0x99   : > { %468 = vmatpush1.bf16.msra.mxu0 %v445_v36  ;;  %485 = vmatprep.mubr.bf16.mxu0 %v1406_v6  ;;  %v207_v36 = vld [vmem:[%s1605_s1 + $0x20] sm:$0xf] }
  0x9a   : > { %v542_v40 = vpop.permute.xlu0 %541  ;;  %1331 = vmatpush3.bf16.msra.mxu1 %v451_v38  ;;  %1332 = vmatprep.mubr.msk.bf16.mxu1 %vm1407_vm0, %v1405_v5  ;;  %v544_v43 = vpop.permute.xlu1 %543 }
  0x9b   : > { %v547_v42 = vsel %vm545_vm5, %v540_v39, %v542_v40  ;;  %1336 = vmatprep.subr.bf16.mxu1 %v1405_v5  ;;  %v548_v44 = vsel %vm545_vm5, %v542_v40, %v544_v43 }
  0x9c   : > { %1279 = vmatprep.subr.msk.bf16.mxu0 %vm245_vm2, %v547_v42  ;;  %v559_v48 = vsel %vm245_vm2, %v548_v44, 0 }
  0x9e   : > { %v646_v47 = vpop.permute.xlu0 %645  ;;  %v648_v49 = vpop.permute.xlu1 %647 }
  0x9f   : > { %v654_v51 = vsel %vm653_vm6, %v646_v47, %v648_v49 }
  0xa0   : > { %1277 = vmatmul.mubr.msk.bf16.vlgmr.msra.gmra.mxu0 %vm241_vm3, %v201_v45  ;;  %1333 = vmatmul.mubr.msk.bf16.vlgmr.msra.gmra.mxu1 %vm241_vm3, %v201_v45  ;;  %v661_v56 = vsel %vm245_vm2, %v654_v51, 0 }
  0xa1   : > { %576 = vmatpush1.bf16.msra.mxu0 %v553_v46  ;;  %593 = vmatprep.mubr.bf16.mxu0 %v1406_v6 }
  0xa2   : > { %v650_v50 = vpop.permute.xlu0 %649  ;;  %1337 = vmatpush3.bf16.msra.mxu1 %v559_v48  ;;  %1338 = vmatprep.mubr.msk.bf16.mxu1 %vm1407_vm0, %v1405_v5  ;;  %v652_v53 = vpop.permute.xlu1 %651 }
  0xa3   : > { %v655_v52 = vsel %vm653_vm6, %v648_v49, %v650_v50  ;;  %1342 = vmatprep.subr.bf16.mxu1 %v1405_v5  ;;  %v656_v54 = vsel %vm653_vm6, %v650_v50, %v652_v53 }
  0xa4   : > { %1282 = vmatprep.subr.msk.bf16.mxu0 %vm245_vm2, %v655_v52  ;;  %v667_v58 = vsel %vm245_vm2, %v656_v54, 0 }
  0xa6   : > { %v754_v57 = vpop.permute.xlu0 %753  ;;  %v756_v59 = vpop.permute.xlu1 %755 }
  0xa7   : > { %v762_v61 = vsel %vm761_vm7, %v754_v57, %v756_v59 }
  0xa8   : > { %1280 = vmatmul.mubr.msk.bf16.vlgmr.msra.gmra.mxu0 %vm241_vm3, %v202_v55  ;;  %1339 = vmatmul.mubr.msk.bf16.vlgmr.msra.gmra.mxu1 %vm241_vm3, %v202_v55  ;;  %v769_v2 = vsel %vm245_vm2, %v762_v61, 0 }
  0xa9   : > { %684 = vmatpush1.bf16.msra.mxu0 %v661_v56  ;;  %701 = vmatprep.mubr.bf16.mxu0 %v1406_v6 }
  0xaa   : > { %v758_v60 = vpop.permute.xlu0 %757  ;;  %1343 = vmatpush3.bf16.msra.mxu1 %v667_v58  ;;  %1344 = vmatprep.mubr.msk.bf16.mxu1 %vm1407_vm0, %v1405_v5  ;;  %v760_v63 = vpop.permute.xlu1 %759 }
  0xab   : > { %v763_v62 = vsel %vm761_vm7, %v756_v59, %v758_v60  ;;  %1348 = vmatprep.subr.bf16.mxu1 %v1405_v5  ;;  %v764_v0 = vsel %vm761_vm7, %v758_v60, %v760_v63 }
  0xac   : > { %1285 = vmatprep.subr.msk.bf16.mxu0 %vm245_vm2, %v763_v62  ;;  %v775_v4 = vsel %vm245_vm2, %v764_v0, 0 }
  0xae   : > { %v862_v3 = vpop.permute.xlu0 %861  ;;  %v864_v7 = vpop.permute.xlu1 %863 }
  0xaf   : > { %v870_v9 = vsel %vm869_vm8, %v862_v3, %v864_v7 }
  0xb0   : > { %1283 = vmatmul.mubr.msk.bf16.vlgmr.msra.gmra.mxu0 %vm241_vm3, %v203_v1  ;;  %1345 = vmatmul.mubr.msk.bf16.vlgmr.msra.gmra.mxu1 %vm241_vm3, %v203_v1  ;;  %v877_v14 = vsel %vm245_vm2, %v870_v9, 0 }
  0xb1   : > { %792 = vmatpush1.bf16.msra.mxu0 %v769_v2  ;;  %809 = vmatprep.mubr.bf16.mxu0 %v1406_v6 }
  0xb2   : > { %v866_v8 = vpop.permute.xlu0 %865  ;;  %1349 = vmatpush3.bf16.msra.mxu1 %v775_v4  ;;  %1350 = vmatprep.mubr.msk.bf16.mxu1 %vm1407_vm0, %v1405_v5  ;;  %v868_v11 = vpop.permute.xlu1 %867 }
  0xb3   : > { %v871_v10 = vsel %vm869_vm8, %v864_v7, %v866_v8  ;;  %1354 = vmatprep.subr.bf16.mxu1 %v1405_v5  ;;  %v872_v12 = vsel %vm869_vm8, %v866_v8, %v868_v11 }
  0xb4   : > { %1288 = vmatprep.subr.msk.bf16.mxu0 %vm245_vm2, %v871_v10  ;;  %v883_v16 = vsel %vm245_vm2, %v872_v12, 0 }
  0xb6   : > { %v970_v15 = vpop.permute.xlu0 %969  ;;  %v972_v17 = vpop.permute.xlu1 %971 }
  0xb7   : > { %v978_v19 = vsel %vm977_vm9, %v970_v15, %v972_v17 }
  0xb8   : > { %1286 = vmatmul.mubr.msk.bf16.vlgmr.msra.gmra.mxu0 %vm241_vm3, %v204_v13  ;;  %1351 = vmatmul.mubr.msk.bf16.vlgmr.msra.gmra.mxu1 %vm241_vm3, %v204_v13  ;;  %v985_v24 = vsel %vm245_vm2, %v978_v19, 0 }
  0xb9   : > { %900 = vmatpush1.bf16.msra.mxu0 %v877_v14  ;;  %917 = vmatprep.mubr.bf16.mxu0 %v1406_v6 }
  0xba   : > { %v974_v18 = vpop.permute.xlu0 %973  ;;  %1355 = vmatpush3.bf16.msra.mxu1 %v883_v16  ;;  %1356 = vmatprep.mubr.msk.bf16.mxu1 %vm1407_vm0, %v1405_v5  ;;  %v976_v21 = vpop.permute.xlu1 %975 }
  0xbb   : > { %v979_v20 = vsel %vm977_vm9, %v972_v17, %v974_v18  ;;  %1360 = vmatprep.subr.bf16.mxu1 %v1405_v5  ;;  %v980_v22 = vsel %vm977_vm9, %v974_v18, %v976_v21 }
  0xbc   : > { %1291 = vmatprep.subr.msk.bf16.mxu0 %vm245_vm2, %v979_v20  ;;  %v991_v26 = vsel %vm245_vm2, %v980_v22, 0 }
  0xbe   : > { %v1078_v25 = vpop.permute.xlu0 %1077  ;;  %v1080_v27 = vpop.permute.xlu1 %1079 }
  0xbf   : > { %v1086_v29 = vsel %vm1085_vm10, %v1078_v25, %v1080_v27 }
  0xc0   : > { %1289 = vmatmul.mubr.msk.bf16.vlgmr.msra.gmra.mxu0 %vm241_vm3, %v205_v23  ;;  %1357 = vmatmul.mubr.msk.bf16.vlgmr.msra.gmra.mxu1 %vm241_vm3, %v205_v23  ;;  %v1093_v34 = vsel %vm245_vm2, %v1086_v29, 0 }
  0xc1   : > { %1008 = vmatpush1.bf16.msra.mxu0 %v985_v24  ;;  %1025 = vmatprep.mubr.bf16.mxu0 %v1406_v6 }
  0xc2   : > { %v1082_v28 = vpop.permute.xlu0 %1081  ;;  %1361 = vmatpush3.bf16.msra.mxu1 %v991_v26  ;;  %1362 = vmatprep.mubr.msk.bf16.mxu1 %vm1407_vm0, %v1405_v5  ;;  %v1084_v31 = vpop.permute.xlu1 %1083 }
  0xc3   : > { %v1087_v30 = vsel %vm1085_vm10, %v1080_v27, %v1082_v28  ;;  %1366 = vmatprep.subr.bf16.mxu1 %v1405_v5  ;;  %v1088_v32 = vsel %vm1085_vm10, %v1082_v28, %v1084_v31 }
  0xc4   : > { %1294 = vmatprep.subr.msk.bf16.mxu0 %vm245_vm2, %v1087_v30  ;;  %v1099_v35 = vsel %vm245_vm2, %v1088_v32, 0 }
  0xc8   : > { %1292 = vmatmul.mubr.msk.bf16.vlgmr.msra.gmra.mxu0 %vm241_vm3, %v206_v33  ;;  %1363 = vmatmul.mubr.msk.bf16.vlgmr.msra.gmra.mxu1 %vm241_vm3, %v206_v33 }
  0xc9   : > { %1116 = vmatpush1.bf16.msra.mxu0 %v1093_v34  ;;  %1133 = vmatprep.mubr.bf16.mxu0 %v1406_v6 }
  0xca   : > { %1367 = vmatpush3.bf16.msra.mxu1 %v1099_v35  ;;  %1368 = vmatprep.mubr.msk.bf16.mxu1 %vm1407_vm0, %v1405_v5 }
  0xd0   : > { %1295 = vmatmul.mubr.msk.bf16.vlgmr.msra.gmra.mxu0 %vm241_vm3, %v207_v36  ;;  %1369 = vmatmul.mubr.msk.bf16.vlgmr.msra.gmra.mxu1 %vm241_vm3, %v207_v36 }
 0x150   : > { %v289_v37 = vpop.f32.mrf.mxu0  ;;  %v330_v39 = vpop.f32.mrf.mxu1 }
 0x152   : > { %v291_v38 = vpop.f32.mrf.mxu0  ;;  %v1322_v41 = vpop.f32.mrf.mxu1 }
 0x154   : > { %v293_v40 = vpop.f32.mrf.mxu0  ;;  %v333_v42 = vpop.f32.mrf.mxu1 }
 0x156   : > { %v294_v6 = vpop.f32.mrf.mxu0  ;;  %v1323_v43 = vpop.f32.mrf.mxu1 }
 0x158   : > { %v382_v44 = vpop.f32.mrf.mxu0  ;;  %v423_v46 = vpop.f32.mrf.mxu1 }
 0x159   : > { %v383_v24 = vadd.f32 %v382_v44, %v289_v37  ;;  %v424_v28 = vadd.f32 %v423_v46, %v330_v39 }
 0x15a   : > { %v384_v45 = vpop.f32.mrf.mxu0  ;;  %v1328_v47 = vpop.f32.mrf.mxu1 }
 0x15b   : > { %v385_v27 = vadd.f32 %v384_v45, %v291_v38 }
 0x15c   : > { %v386_v5 = vpop.f32.mrf.mxu0  ;;  %v426_v49 = vpop.f32.mrf.mxu1 }
 0x15e   : > { %v387_v48 = vpop.f32.mrf.mxu0  ;;  %v1329_v50 = vpop.f32.mrf.mxu1 }
 0x160   : > { %v487_v51 = vpop.f32.mrf.mxu0  ;;  %v528_v53 = vpop.f32.mrf.mxu1 }
 0x161   : > { %v534_v29 = vadd.f32 %v487_v51, %v383_v24  ;;  %v536_v33 = vadd.f32 %v528_v53, %v424_v28  ;;  %v1188_v53 = vpop.permute.xlu0 %1187 }
 0x162   : > { %v489_v52 = vpop.f32.mrf.mxu0  ;;  %v1334_v55 = vpop.f32.mrf.mxu1 }
 0x163   : > { %v535_v32 = vadd.f32 %v489_v52, %v385_v27 }
 0x164   : > { %v491_v54 = vpop.f32.mrf.mxu0  ;;  %v531_v57 = vpop.f32.mrf.mxu1 }
 0x166   : > { %v492_v56 = vpop.f32.mrf.mxu0  ;;  %v1335_v58 = vpop.f32.mrf.mxu1 }
 0x168   : > { %v595_v59 = vpop.f32.mrf.mxu0  ;;  %v636_v61 = vpop.f32.mrf.mxu1 }
 0x169   : > { %v642_v34 = vadd.f32 %v595_v59, %v534_v29  ;;  %v644_v41 = vadd.f32 %v636_v61, %v536_v33  ;;  %v1196_v59 = vpop.permute.xlu1 %1195 }
 0x16a   : > { %v597_v60 = vpop.f32.mrf.mxu0  ;;  %v1340_v63 = vpop.f32.mrf.mxu1 }
 0x16b   : > { %v643_v40 = vadd.f32 %v597_v60, %v535_v32 }
 0x16c   : > { %v599_v62 = vpop.f32.mrf.mxu0  ;;  %v639_v1 = vpop.f32.mrf.mxu1 }
 0x16e   : > { %v600_v0 = vpop.f32.mrf.mxu0  ;;  %v1341_v2 = vpop.f32.mrf.mxu1 }
 0x170   : > { %v703_v3 = vpop.f32.mrf.mxu0  ;;  %v744_v7 = vpop.f32.mrf.mxu1 }
 0x171   : > { %v750_v6 = vadd.f32 %v703_v3, %v642_v34  ;;  %v752_v47 = vadd.f32 %v744_v7, %v644_v41 }
 0x172   : > { %v705_v4 = vpop.f32.mrf.mxu0  ;;  %v1346_v9 = vpop.f32.mrf.mxu1 }
 0x173   : > { %v751_v5 = vadd.f32 %v705_v4, %v643_v40 }
 0x174   : > { %v707_v8 = vpop.f32.mrf.mxu0  ;;  %v747_v11 = vpop.f32.mrf.mxu1 }
 0x176   : > { %v708_v10 = vpop.f32.mrf.mxu0  ;;  %v1347_v12 = vpop.f32.mrf.mxu1 }
 0x178   : > { %v811_v13 = vpop.f32.mrf.mxu0  ;;  %v852_v15 = vpop.f32.mrf.mxu1 }
 0x179   : > { %v858_v37 = vadd.f32 %v811_v13, %v750_v6  ;;  %v860_v39 = vadd.f32 %v852_v15, %v752_v47 }
 0x17a   : > { %v813_v14 = vpop.f32.mrf.mxu0  ;;  %v1352_v17 = vpop.f32.mrf.mxu1 }
 0x17b   : > { %v859_v38 = vadd.f32 %v813_v14, %v751_v5 }
 0x17c   : > { %v815_v16 = vpop.f32.mrf.mxu0  ;;  %v855_v19 = vpop.f32.mrf.mxu1 }
 0x17e   : > { %v816_v18 = vpop.f32.mrf.mxu0  ;;  %v1353_v20 = vpop.f32.mrf.mxu1 }
 0x180   : > { %v919_v21 = vpop.f32.mrf.mxu0  ;;  %v960_v23 = vpop.f32.mrf.mxu1 }
 0x181   : > { %v966_v45 = vadd.f32 %v919_v21, %v858_v37  ;;  %v968_v51 = vadd.f32 %v960_v23, %v860_v39 }
 0x182   : > { %v921_v22 = vpop.f32.mrf.mxu0  ;;  %v1358_v26 = vpop.f32.mrf.mxu1 }
 0x183   : > { %v967_v50 = vadd.f32 %v921_v22, %v859_v38 }
 0x184   : > { %v923_v25 = vpop.f32.mrf.mxu0  ;;  %v963_v31 = vpop.f32.mrf.mxu1 }
 0x186   : > { %v924_v30 = vpop.f32.mrf.mxu0  ;;  %v1359_v35 = vpop.f32.mrf.mxu1 }
 0x188   : > { %v1027_v36 = vpop.f32.mrf.mxu0  ;;  %v1068_v43 = vpop.f32.mrf.mxu1 }
 0x189   : > { %v1074_v52 = vadd.f32 %v1027_v36, %v966_v45  ;;  %v1076_v57 = vadd.f32 %v1068_v43, %v968_v51 }
 0x18a   : > { %v1029_v42 = vpop.f32.mrf.mxu0  ;;  %v1364_v48 = vpop.f32.mrf.mxu1 }
 0x18b   : > { %v1075_v56 = vadd.f32 %v1029_v42, %v967_v50 }
 0x18c   : > { %v1031_v44 = vpop.f32.mrf.mxu0  ;;  %v1071_v49 = vpop.f32.mrf.mxu1 }
 0x18e   : > { %v1032_v46 = vpop.f32.mrf.mxu0  ;;  %v1365_v54 = vpop.f32.mrf.mxu1 }
 0x190   : > { %v1135_v55 = vpop.f32.mrf.mxu0  ;;  %v1176_v61 = vpop.f32.mrf.mxu1 }
 0x191   : > { %v1182_v58 = vadd.f32 %v1135_v55, %v1074_v52  ;;  %v1184_v0 = vadd.f32 %v1176_v61, %v1076_v57 }
 0x192   : > { %v1137_v60 = vpop.f32.mrf.mxu0  ;;  %v1370_v2 = vpop.f32.mrf.mxu1 }
 0x193   : > { %v1190_v62 = vmul.f32 %v1188_v53, %v1182_v58  ;;  %v1183_v63 = vadd.f32 %v1137_v60, %v1075_v56  ;;  %v1192_v4 = vmul.f32 %v1188_v53, %v1184_v0 }
 0x194   : > { %v1139_v1 = vpop.f32.mrf.mxu0  ;;  %v1179_v9 = vpop.f32.mrf.mxu1 }
 0x195   : > { %v1191_v3 = vmul.f32 %v1188_v53, %v1183_v63  ;;  %v1198_v7 = vadd.f32 %v1196_v59, %v1190_v62  ;;  %v1200_v11 = vadd.f32 %v1196_v59, %v1192_v4 }
 0x196   : > { %v1140_v8 = vpop.f32.mrf.mxu0  ;;  %v1371_v13 = vpop.f32.mrf.mxu1 }
 0x197   : > { %v1199_v10 = vadd.f32 %v1196_v59, %v1191_v3  ;;  %v1201_v12 = vmax.f32 %v1198_v7, 0.0  ;;  %v1203_v15 = vmax.f32 %v1200_v11, 0.0 }
 0x199   : > { %v1202_v14 = vmax.f32 %v1199_v10, 0.0  ;;  %1204 = vst [vmem:[%s197_s30] sm:$0xff] %v1201_v12  ;;  %1206 = vst [vmem:[%s197_s30 + $0x10] sm:$0xff] %v1203_v15 }
 0x19b   : > { %1205 = vst [vmem:[%s197_s30 + $0x8] sm:$0xff] %v1202_v14 }
 0x19c PF: > { %s14_s15 = sadd.s32 1, %s1402_s15  }
 0x19d   : > { %p11_p4 = scmp.ge.s32.totalorder %s14_s15, 4  }
 0x19f   :  { %13 = sbr.rel (!%p11_p4) target bundleno = 1 (0x1), region = 66 }

</bundles_post_ra>
